<compile_context>
chip_gen: v7x
topology: tpu7x:2x2x1
jax: 0.10.0
libtpu: 0.0.40
codegen_flags: <defaults>
</compile_context>

<pallas_src>
import jax
import jax.numpy as jnp
from jax.experimental import pallas as pl
from jax.experimental.pallas import tpu as pltpu


_LANE = 128


def conv_mlp_kernel(x_ref, w1_ref, b1_ref, w2_ref, b2_ref, o_ref):
    # x_ref : (1, C_in, tl)   channels-first input tile (lanes = positions)
    # w1_ref: (H, C_in)       fc1 weight (PyTorch (out, in) layout, no transpose)
    # b1_ref: (H, 1)
    # w2_ref: (C_out, H)      fc2 weight
    # b2_ref: (C_out, 1)
    # o_ref : (1, C_out, tl)
    x = x_ref[0]                      # (C_in, tl), native dtype — no VPU upcast
    w1 = w1_ref[...]
    w2 = w2_ref[...]

    # fc1: 1x1 conv == matmul over channels; MXU accumulates in f32.
    h = jnp.dot(w1, x, preferred_element_type=jnp.float32)        # (H, tl) f32

    # norm = nn.Identity(); bias-add + ReLU kept in f32 on the VPU.
    h = jnp.maximum(h + b1_ref[...].astype(jnp.float32), 0.0)

    # drop = nn.Dropout(0.2): identity in eval/inference mode.
    # TODO(synk): training-mode dropout (pltpu.prng_seed + stateful_bernoulli)
    # is not implemented; this kernel has inference semantics only.

    # fc2: feed the MXU its native operand dtype (bf16 weights stay bf16).
    y = jnp.dot(w2, h.astype(w2.dtype), preferred_element_type=jnp.float32)
    y = y + b2_ref[...].astype(jnp.float32)
    o_ref[0] = y.astype(o_ref.dtype)


def _round_up(x, m):
    return ((x + m - 1) // m) * m


def _pick_lane_tile(L, C_in, H, C_out, elt_bytes, tl_target, vmem_budget_bytes):
    """Largest lane tile (multiple of 128) fitting the VMEM budget.

    Counts double-buffered input/output tiles, the f32 hidden intermediate,
    and two copies of the invariant weights/biases, so the kernel stays under
    v5e's 16 MiB scoped default and v7x's 64 MiB physical VMEM without
    touching vmem_limit_bytes.
    """
    tl_target = max(_LANE, (tl_target // _LANE) * _LANE)
    per_lane = 2 * C_in * elt_bytes + 2 * C_out * elt_bytes + 4 * H
    fixed = 2 * (H * C_in + C_out * H + H + C_out) * elt_bytes
    avail = max(vmem_budget_bytes - fixed, per_lane * _LANE)
    tl_cap = max(_LANE, (avail // per_lane) // _LANE * _LANE)
    tl = min(tl_target, tl_cap, _round_up(L, _LANE))
    return int(tl)


def conv_mlp(x_ncl, w1, b1, w2, b2, *, tl=1024, vmem_budget_bytes=12 * 1024 * 1024):
    """ConvMlp forward (inference).

    x_ncl: (N, C_in, L).  w1: (H, C_in), b1: (H,), w2: (C_out, H), b2: (C_out,).
    Returns (N, C_out, L).
    """
    N, C_in, L = x_ncl.shape
    H = w1.shape[0]
    C_out = w2.shape[0]
    elt = x_ncl.dtype.itemsize

    tl = _pick_lane_tile(L, C_in, H, C_out, elt, tl, vmem_budget_bytes)
    # Pad only to the 128-lane boundary (not to a multiple of tl); partial edge
    # blocks are handled by Pallas via the cdiv grid.
    L_pad = _round_up(L, _LANE)
    x_p = x_ncl if L_pad == L else jnp.pad(x_ncl, ((0, 0), (0, 0), (0, L_pad - L)))

    b1_2d = b1.reshape(H, 1)
    b2_2d = b2.reshape(C_out, 1)

    grid = (N, pl.cdiv(L_pad, tl))

    flops = 2 * N * L_pad * (C_in * H + H * C_out)
    bytes_accessed = int(
        N * L_pad * (C_in + C_out) * elt
        + (H * C_in + C_out * H) * w1.dtype.itemsize
        + (H + C_out) * b1.dtype.itemsize
    )
    cost = pl.CostEstimate(
        flops=int(flops), transcendentals=0, bytes_accessed=bytes_accessed
    )

    out = pl.pallas_call(
        conv_mlp_kernel,
        out_shape=jax.ShapeDtypeStruct((N, C_out, L_pad), x_ncl.dtype),
        grid_spec=pltpu.PrefetchScalarGridSpec(
            num_scalar_prefetch=0,
            grid=grid,
            in_specs=[
                pl.BlockSpec((1, C_in, tl), lambda n, l: (n, 0, l)),
                # Invariant operands: constant index_map -> fetched once.
                pl.BlockSpec((H, C_in), lambda n, l: (0, 0)),
                pl.BlockSpec((H, 1), lambda n, l: (0, 0)),
                pl.BlockSpec((C_out, H), lambda n, l: (0, 0)),
                pl.BlockSpec((C_out, 1), lambda n, l: (0, 0)),
            ],
            out_specs=pl.BlockSpec((1, C_out, tl), lambda n, l: (n, 0, l)),
        ),
        compiler_params=pltpu.CompilerParams(
            dimension_semantics=("parallel", "parallel"),
        ),
        cost_estimate=cost,
    )(x_p, w1, b1_2d, w2, b2_2d)

    return out if L_pad == L else out[:, :, :L]


if __name__ == "__main__":
    key = jax.random.PRNGKey(0)
    N, C_in, L = 2, 4, 16
    hidden = 32
    C_out = C_in  # out_features defaults to in_features

    k_x, k_w1, k_b1, k_w2, k_b2 = jax.random.split(key, 5)
    x = jax.random.normal(k_x, (N, C_in, L), dtype=jnp.float32)
    # Parameter shapes match nn.Conv1d(kernel_size=1) weights with k squeezed.
    w1 = jax.random.normal(k_w1, (hidden, C_in), dtype=jnp.float32) * 0.1
    b1 = jax.random.normal(k_b1, (hidden,), dtype=jnp.float32) * 0.1
    w2 = jax.random.normal(k_w2, (C_out, hidden), dtype=jnp.float32) * 0.1
    b2 = jax.random.normal(k_b2, (C_out,), dtype=jnp.float32) * 0.1

    out = conv_mlp(x, w1, b1, w2, b2)
    jax.block_until_ready(out)

    # Pure-JAX reference (1x1 conv == einsum over channels).
    h_ref = jnp.maximum(jnp.einsum("ncl,hc->nhl", x, w1) + b1[None, :, None], 0.0)
    y_ref = jnp.einsum("nhl,oh->nol", h_ref, w2) + b2[None, :, None]
    assert out.shape == (N, C_out, L)
    assert jnp.allclose(out, y_ref, atol=1e-5, rtol=1e-5)

    print("KERNEL_OK")
</pallas_src>

<mosaic_0001>
module attributes {stable_mosaic.version = 11 : i64} {
  func.func @conv_mlp_kernel(%arg0: i32, %arg1: i32, %arg2: memref<1x4x128xf32, #tpu.memory_space<vmem>>, %arg3: memref<32x4xf32, #tpu.memory_space<vmem>>, %arg4: memref<32x1xf32, #tpu.memory_space<vmem>>, %arg5: memref<4x32xf32, #tpu.memory_space<vmem>>, %arg6: memref<4x1xf32, #tpu.memory_space<vmem>>, %arg7: memref<1x4x128xf32, #tpu.memory_space<vmem>>) attributes {dimension_semantics = [#tpu.dimension_semantics<parallel>, #tpu.dimension_semantics<parallel>], iteration_bounds = array<i64: 2, 1>, scalar_prefetch = 0 : i64, scratch_operands = 0 : i64, tpu.core_type = #tpu.core_type<tc>, window_params = [{transform_indices = @transform_0, window_bounds = array<i64: 1, 4, 128>}, {pipeline_mode = #tpu.pipeline_mode<synchronous>, transform_indices = @transform_1, window_bounds = array<i64: 32, 4>}, {pipeline_mode = #tpu.pipeline_mode<synchronous>, transform_indices = @transform_2, window_bounds = array<i64: 32, 1>}, {pipeline_mode = #tpu.pipeline_mode<synchronous>, transform_indices = @transform_3, window_bounds = array<i64: 4, 32>}, {pipeline_mode = #tpu.pipeline_mode<synchronous>, transform_indices = @transform_4, window_bounds = array<i64: 4, 1>}, {transform_indices = @transform_5, window_bounds = array<i64: 1, 4, 128>}]} {
    %c0 = arith.constant 0 : index
    %c0_0 = arith.constant 0 : index
    %c0_1 = arith.constant 0 : index
    %0 = vector.load %arg2[%c0, %c0_0, %c0_1] : memref<1x4x128xf32, #tpu.memory_space<vmem>>, vector<1x4x128xf32>
    %1 = vector.shape_cast %0 : vector<1x4x128xf32> to vector<4x128xf32>
    %c0_2 = arith.constant 0 : index
    %c0_3 = arith.constant 0 : index
    %2 = vector.load %arg3[%c0_2, %c0_3] : memref<32x4xf32, #tpu.memory_space<vmem>>, vector<32x4xf32>
    %c0_4 = arith.constant 0 : index
    %c0_5 = arith.constant 0 : index
    %3 = vector.load %arg5[%c0_4, %c0_5] : memref<4x32xf32, #tpu.memory_space<vmem>>, vector<4x32xf32>
    %cst = arith.constant dense<0.000000e+00> : vector<32x128xf32>
    %4 = tpu.matmul %2, %1, %cst {dimension_numbers = #tpu.dot_dimension_numbers<[1], [0], [0], [1], [0, 0, 1, 1], [], []>} : vector<32x4xf32>, vector<4x128xf32>, vector<32x128xf32> -> vector<32x128xf32>
    %c0_6 = arith.constant 0 : index
    %c0_7 = arith.constant 0 : index
    %5 = vector.load %arg4[%c0_6, %c0_7] : memref<32x1xf32, #tpu.memory_space<vmem>>, vector<32x1xf32>
    %6 = vector.broadcast %5 : vector<32x1xf32> to vector<32x128xf32>
    %7 = arith.addf %4, %6 : vector<32x128xf32>
    %cst_8 = arith.constant 0.000000e+00 : f32
    %8 = vector.broadcast %cst_8 : f32 to vector<32x128xf32>
    %9 = arith.maximumf %7, %8 : vector<32x128xf32>
    %cst_9 = arith.constant dense<0.000000e+00> : vector<4x128xf32>
    %10 = tpu.matmul %3, %9, %cst_9 {dimension_numbers = #tpu.dot_dimension_numbers<[1], [0], [0], [1], [0, 0, 1, 1], [], []>} : vector<4x32xf32>, vector<32x128xf32>, vector<4x128xf32> -> vector<4x128xf32>
    %c0_10 = arith.constant 0 : index
    %c0_11 = arith.constant 0 : index
    %11 = vector.load %arg6[%c0_10, %c0_11] : memref<4x1xf32, #tpu.memory_space<vmem>>, vector<4x1xf32>
    %12 = vector.broadcast %11 : vector<4x1xf32> to vector<4x128xf32>
    %13 = arith.addf %10, %12 : vector<4x128xf32>
    %c0_12 = arith.constant 0 : index
    %c0_13 = arith.constant 0 : index
    %c0_14 = arith.constant 0 : index
    %14 = vector.load %arg7[%c0_12, %c0_13, %c0_14] : memref<1x4x128xf32, #tpu.memory_space<vmem>>, vector<1x4x128xf32>
    %15 = vector.shape_cast %14 : vector<1x4x128xf32> to vector<4x128xf32>
    %16 = vector.shape_cast %13 : vector<4x128xf32> to vector<1x4x128xf32>
    tpu.vector_store %arg7[%c0_12, %c0_13, %c0_14], %16 {strides = array<i32>} : memref<1x4x128xf32, #tpu.memory_space<vmem>>, vector<1x4x128xf32>,
    return
  }
  func.func @transform_0(%arg0: i32, %arg1: i32) -> (i32, i32, i32) {
    %c0_i32 = arith.constant 0 : i32
    %c0_i32_0 = arith.constant 0 : i32
    return %arg0, %c0_i32, %arg1 : i32, i32, i32
  }
  func.func @transform_1(%arg0: i32, %arg1: i32) -> (i32, i32) {
    %c0_i32 = arith.constant 0 : i32
    %c0_i32_0 = arith.constant 0 : i32
    %c0_i32_1 = arith.constant 0 : i32
    return %c0_i32, %c0_i32_0 : i32, i32
  }
  func.func @transform_2(%arg0: i32, %arg1: i32) -> (i32, i32) {
    %c0_i32 = arith.constant 0 : i32
    %c0_i32_0 = arith.constant 0 : i32
    %c0_i32_1 = arith.constant 0 : i32
    return %c0_i32, %c0_i32_0 : i32, i32
  }
  func.func @transform_3(%arg0: i32, %arg1: i32) -> (i32, i32) {
    %c0_i32 = arith.constant 0 : i32
    %c0_i32_0 = arith.constant 0 : i32
    %c0_i32_1 = arith.constant 0 : i32
    return %c0_i32, %c0_i32_0 : i32, i32
  }
  func.func @transform_4(%arg0: i32, %arg1: i32) -> (i32, i32) {
    %c0_i32 = arith.constant 0 : i32
    %c0_i32_0 = arith.constant 0 : i32
    %c0_i32_1 = arith.constant 0 : i32
    return %c0_i32, %c0_i32_0 : i32, i32
  }
  func.func @transform_5(%arg0: i32, %arg1: i32) -> (i32, i32, i32) {
    %c0_i32 = arith.constant 0 : i32
    %c0_i32_0 = arith.constant 0 : i32
    return %arg0, %c0_i32, %arg1 : i32, i32, i32
  }
}

</mosaic_0001>

<bundles_post_ra>
// kernel: tpu_custom_call.1
= control target key start
LH: loop header
LB: loop body
LE: loop exit
PB: predicated region body
PF: predicated region fallthrough
CT: control target
= control target key end

     0   :  { %10 = vsyncpa [#allocation3], 0  ;;  %s922_s0 = inlined_call_operand.vmem [shape: f32[2,4,128], index: 0, kind: input, shape index: {}]   ;;  %s923_s1 = inlined_call_operand.vmem [shape: f32[32,4], index: 1, kind: input, shape index: {}]   ;;  %s924_s2 = inlined_call_operand.vmem [shape: f32[32,1], index: 2, kind: input, shape index: {}]   ;;  %s925_s3 = inlined_call_operand.vmem [shape: f32[4,32], index: 3, kind: input, shape index: {}]   ;;  %s926_s4 = inlined_call_operand.vmem [shape: f32[4,1], index: 4, kind: input, shape index: {}]   ;;  %s927_s5 = inlined_call_operand.hbm [shape: f32[2,4,128], index: 5, kind: output, shape index: {}]  }
   0x1   :  { %12 = vsyncpa [#allocation3 + $0x1], 0  ;;  %s776_s18 = smov 0   ;;  %s778_s19 = smov 0  }
   0x2   :  { %s780_s20 = smov 0   ;;  %s782_s21 = smov 0  }
   0x3   :  { %s784_s22 = smov 0   ;;  %s786_s23 = smov 0  }
   0x4 LB: > { %s548_s24 = sadd.s32 4294967295, %s739_s23   ;;  %s549_s25 = sadd.s32 4294967294, %s739_s23   ;;  %s739_s23 = sphi %s786_s23, %s18_s23   ;;  %s735_s22 = sphi %s784_s22, %s934_s22   ;;  %s731_s21 = sphi %s782_s21, %s933_s21   ;;  %s727_s20 = sphi %s780_s20, %s932_s20   ;;  %s723_s19 = sphi %s778_s19, %s931_s19   ;;  %s719_s18 = sphi %s776_s18, %s930_s18  }
   0x5   : > { %s30_s26 = sadd.s32 1, %s735_s22  ;;  %s151_s27 = sadd.s32 1, %s727_s20 }
   0x6   : > { %p32_p0 = scmp.ge.s32.totalorder %s30_s26, 2  ;;  %p161_p1 = scmp.ne.s32.totalorder %s727_s20, %s723_s19 }
   0x7   : > { %p162_p2 = scmp.eq.s32.totalorder %s548_s24, 1  ;;  %p167_p3 = scmp.ne.s32.totalorder %s723_s19, %s719_s18 }
   0x8   : > { %s936_s26 = smov (%p32_p0, %s30_s26), 0  ;;  %p168_p5 = scmp.eq.s32.totalorder %s549_s25, 1 }
   0x9   : > { %p816_p4 = por %p162_p2, %p161_p1  ;;  %s146_s29 = ssub.s32 %s735_s22, %s936_s26 }
   0xa   : > { %p552_p6 = scmp.ge.s32.totalorder %s739_s23, 1  ;;  %p149_p7 = scmp.eq.s32.totalorder %s146_s29, 0 }
   0xb   : > { %p823_p8 = por %p168_p5, %p167_p3  ;;  %p208_p9 = scmp.lt.s32.totalorder %s739_s23, 3 }
   0xc   : > { %s829_s6 = scalar_select %p149_p7, %s727_s20, %s151_s27  }
   0xd   : > { %p209_p10 = pnand %p552_p6, %p208_p9 }
   0xe   : > { %p238_p11 = scmp.lt.s32.totalorder (!%p209_p10), %s731_s21, 1  ;;  %v246_v0 = vld [vmem:[%s923_s1] sm:$0xff] (!%p209_p10)  ;;  %vm275_vm0 = vcmask (!%p209_p10), 31744   ;;  %v741_v2 = vmov (!%p209_p10), 0   ;;  %v253_v3 = vld [vmem:[%s924_s2 + $0x10] sm:$0xff] (!%p209_p10)  ;;  %vm288_vm1 = vcmask (!%p209_p10), 1043456  }
   0xf   : > { %212 = sbr.rel (%p209_p10) target bundleno = 483 (0x1e3), region = 40  ;;  %577 = vmatprep.mubr.msk.f32.mxu0 (!%p209_p10), %vm275_vm0, %v246_v0  ;;  %v251_v1 = vld [vmem:[%s924_s2] sm:$0xff] (!%p209_p10)  ;;  %659 = vset.pattern.permute.xlu0 (!%p209_p10), %v741_v2  ;;  %v252_v4 = vld [vmem:[%s924_s2 + $0x8] sm:$0xff] (!%p209_p10)  ;;  %v254_v5 = vld [vmem:[%s924_s2 + $0x18] sm:$0xff] (!%p209_p10)  ;;  %v742_v11 = vmov (!%p209_p10), 0.0|0.0   ;;  %vm743_vm2 = vmmov (!%p209_p10), 0  }
  0x10   : > { %660 = vset.pattern.permute.xlu1 (!%p209_p10), %v741_v2  ;;  %257 = vperm.xlu0 (!%p209_p10), %659, %v251_v1   ;;  %v247_v7 = vld [vmem:[%s923_s1 + $0x8] sm:$0xff] (!%p209_p10)  ;;  %v248_v8 = vld [vmem:[%s923_s1 + $0x10] sm:$0xff] (!%p209_p10)  ;;  %v381_v9 = vld [vmem:[%s926_s4] sm:$0xf] (!%p209_p10)  ;;  %v744_v12 = vmov (!%p209_p10), 0.0   ;;  %vm387_vm3 = vcmask (!%p209_p10), 261120  }
  0x11   : > { %267 = vperm.xlu1 (!%p209_p10), %660, %v253_v3   ;;  %v249_v10 = vld [vmem:[%s923_s1 + $0x18] sm:$0xff] (!%p209_p10)  ;;  %594 = vmatprep.subr.bf16.mxu1 (!%p209_p10), %v742_v11  ;;  %v250_v31 = vld [vmem:[%s925_s3] sm:$0xf] (!%p209_p10)  ;;  %s235_s17 = sand.u32 (!%p209_p10), 1, %s723_s19  }
  0x12   : > { %591 = vmatprep.mubr.msk.f32.mxu1 (!%p209_p10), %vm743_vm2, %v744_v12  ;;  %s553_s24 = sshll.u32 (!%p209_p10), %s235_s17, 2  ;;  %s463_s10 = scalar_lea.sflag (!%p209_p10), [#allocation3], %s235_s17 }
  0x13   : > { %s237_s27 = scalar_lea.vmem (!%p209_p10), [#allocation2], %s553_s24 }
  0x14   : > { %262 = vperm.xlu0 (!%p209_p10), %659, %v252_v4   ;;  %s477_s29 = sshll.u32 (!%p209_p10), %s237_s27, 4  ;;  %s877_s29 = int_to_ptr.vmem [resolvable:$true] %s477_s29 }
  0x15   : > { %272 = vperm.xlu1 (!%p209_p10), %660, %v254_v5  }
  0x16   : > { %s239_s11 = scalar_select %p238_p11, %s731_s21, 1 }
  0x18   : > { %s554_s14 = sshll.u32 %s239_s11, 2  ;;  %384 = vperm.xlu0 %659, %v381_v9   ;;  %s661_s11 = scalar_lea.vmem %s877_s29, 64 }
  0x19   : > { %s244_s25 = scalar_lea.vmem %s922_s0, %s554_s14  ;;  %p662_p12 = scmp.ne.s32.totalorder %s877_s29, %s661_s11 }
  0x1a   : > { %v245_v6 = vld [vmem:[%s244_s25] sm:$0xf]  ;;  %s562_s25 = sshll.u32 %s731_s21, 6  ;;  %s745_s21 = smov [#allocation2]  }
  0x1b   : > { %575 = vmatprep.subr.msk.mxu0 %vm288_vm1, %v245_v6  ;;  %s875_s9 = scalar_lea.hbm %s927_s5, %s562_s25  ;;  %p663_p13 = pnand %p662_p12, %p816_p4 }
  0x1c   : > { %576 = vmatpush3.msk.msra.mxu0 %vm288_vm1, %v245_v6  ;;  %s665_s12 = sshll.u32 %s745_s21, 4  ;;  %s666_s12 = int_to_ptr.vmem [resolvable:$false] %s665_s12 }
  0x1d   : > { %578 = vmatmul.mubr.msk.f32.vlgmr.msra.gmra.mrb[0].mxu0 %vm275_vm0, %v247_v7  ;;  %p664_p0 = pneg %p663_p13  ;;  %s667_s13 = scalar_lea.vmem %s666_s12, 128 }
  0x1e   : > { %580 = vmatprep.mubr.msk.f32.mxu0 %vm275_vm0, %v248_v8  ;;  %p668_p1 = scmp.lt.s32.totalorder %s877_s29, %s666_s12  ;;  %p669_p2 = scmp.lt.s32.totalorder %s667_s13, %s661_s11 }
  0x20   : > { %p670_p3 = por %p669_p2, %p668_p1 }
  0x21   : > { %581 = vmatmul.mubr.msk.f32.gmra.mrb[2].mxu0 %vm275_vm0, %v249_v10 }
  0x22   : > { %p671_p5 = pnand %p670_p3, %p664_p0 }
  0x8f   : > { %v258_v13 = vpop.permute.xlu0 %257 }
  0x90   : > { %v268_v14 = vpop.permute.xlu1 %267 }
  0x93   : > { %v263_v15 = vpop.permute.xlu0 %262 }
  0x94   : > { %v273_v21 = vpop.permute.xlu1 %272 }
  0x97   : > { %v385_v32 = vpop.permute.xlu0 %384 }
  0xf0   : > { %v579_v16 = vpop.f32.mrb[0].mxu0 }
  0xf1   : > { %v364_v17 = vadd.f32 %v579_v16, %v263_v15  ;;  %v358_v18 = vpop.f32.mrb[1].mxu0 }
  0xf2   : > { %v359_v19 = vadd.f32 %v358_v18, %v258_v13 }
  0xf3   : > { %v378_v20 = vmax.f32 %v364_v17, 0.0 }
  0xf4   : > { %v377_v22 = vmax.f32 %v359_v19, 0.0  ;;  %v582_v23 = vpop.f32.mrb[2].mxu0 }
  0xf5   : > { %v374_v24 = vadd.f32 %v582_v23, %v273_v21  ;;  %v368_v25 = vpop.f32.mrb[3].mxu0 }
  0xf6   : > { %v369_v26 = vadd.f32 %v368_v25, %v268_v14  ;;  %v595_v27 = vpack.c.bf16 %v378_v20, %v377_v22 }
  0xf7   : > { %v380_v28 = vmax.f32 %v374_v24, 0.0 }
  0xf8   : > { %v379_v29 = vmax.f32 %v369_v26, 0.0  ;;  %596 = vmatpush3.bf16.msra.mxu1 %v595_v27 }
  0xf9   : > { %597 = vmatprep.subr.bf16.mxu1 %v742_v11 }
  0xfa   : > { %v598_v30 = vpack.c.bf16 %v380_v28, %v379_v29 }
  0xfc   : > { %599 = vmatpush3.bf16.msra.mxu1 %v598_v30 }
  0xff   : > { %592 = vmatmul.mubr.msk.f32.vlgmr.msra.gmra.mrb[0].mxu1 %vm387_vm3, %v250_v31 }
 0x1d2   : > { %v457_v33 = vpop.f32.mrb[0].mxu1 }
 0x1d3   : > { %v458_v34 = vadd.f32 %v457_v33, %v385_v32  ;;  %v593_v35 = vpop.f32.mrb[1].mxu1 }
 0x1d5   : > { %461 = vst [vmem:[%s237_s27] sm:$0xf] %v458_v34 }
 0x1d6   : > { %674 = shalt.err (!%p671_p5)
}
 0x1d7   : > { %s675_s14 = scalar_lea.hbm %s875_s9, 64  ;;  %s679_s17 = scalar_lea.hbm %s927_s5, 128 }
 0x1d8   : > { %p676_p6 = scmp.ne.s32.totalorder %s875_s9, %s675_s14  ;;  %p680_p10 = scmp.lt.u32.totalorder %s875_s9, %s927_s5 }
 0x1d9   : > { %p681_p11 = scmp.lt.u32.totalorder %s679_s17, %s675_s14  ;;  %p683_p13 = scmp.lt.u32.totalorder %s675_s14, %s875_s9 }
 0x1da   : > { %p677_p7 = pnand %p676_p6, %p816_p4 }
 0x1db   : > { %p682_p12 = por %p681_p11, %p680_p10 }
 0x1dc   : > { %p678_p9 = pneg %p677_p7 }
 0x1dd   : > { %p684_p0 = por %p683_p13, %p682_p12 }
 0x1df   : > { %p685_p1 = pnand %p684_p0, %p678_p9 }
 0x1e1   : > { %688 = shalt.err (!%p685_p1)
}
 0x1e2   : > { %600 = dma.vmem_to_hbm [thread:$0]  (%p816_p4), %s877_s29, 64, %s875_s9, %s463_s10  }
 0x1e3 PF: > { %p606_p2 = scmp.ge.s32.totalorder %s739_s23, 2  ;;  %s489_s27 = sand.u32 1, %s719_s18  }
 0x1e4   : > { %s490_s7 = scalar_lea.sflag [#allocation3], %s489_s27 }
 0x1e5   : > { %p603_p3 = pnand %p606_p2, %p823_p8 }
 0x1e7   : > { %714 = dma.done.wait (!%p603_p3), %s490_s7, 64  }
 0x1e8   : > { %716 = vsyncadd (!%p603_p3), %s490_s7, 4294967232  ;;  %s18_s23 = sadd.s32 1, %s739_s23   ;;  %s930_s18 = smov %s723_s19 }
 0x1e9   : > { %p15_p5 = scmp.ge.s32.totalorder %s18_s23, 4   ;;  %s931_s19 = smov %s727_s20 }
 0x1ea   : > { %s932_s20 = smov %s829_s6  ;;  %s933_s21 = smov %s735_s22 }
 0x1eb   : > { %s934_s22 = smov %s936_s26  ;;  %17 = sbr.rel (!%p15_p5) target bundleno = 4 (0x4), region = 75 }
 0x1f2   :  { %495 = vsyncpa [#allocation3], 1 }
 0x1f3   :  { %497 = vsyncpa [#allocation3 + $0x1], 1 }

</bundles_post_ra>
